<compile_context>
chip_gen: v7x
topology: tpu7x:2x2x1
jax: 0.10.0
libtpu: 0.0.40
codegen_flags: <defaults>
</compile_context>

<pallas_src>
import functools

import jax
import jax.numpy as jnp
from jax import lax
from jax.experimental import pallas as pl
from jax.experimental.pallas import tpu as pltpu


def _elu(x):
    # ELU(alpha=1): x if x > 0 else exp(x) - 1   (clamp arg to avoid exp overflow)
    return jnp.where(x > 0, x, jnp.exp(jnp.minimum(x, 0.0)) - 1.0)


def _inverted_residual_kernel(
    x_ref,
    w_exp_ref, b_exp_ref,
    w_dw_ref, b_dw_ref,
    w_proj_ref, b_proj_ref,
    o_ref,
    pad_ref,
    *,
    H, W, lane_pad, use_res_connect,
):
    Cin = x_ref.shape[1]
    Ch = b_dw_ref.shape[0]
    Cout = b_proj_ref.shape[0]
    HW = H * W

    x = x_ref[0]                                     # (Cin, HW) f32, lane-dense

    # ---- 1x1 expand conv (BN scale pre-folded) + bias + ELU : VPU FMAs ----
    w_exp = w_exp_ref[...]                           # (Cin, Ch, 1)
    acc = jnp.zeros((Ch, HW), jnp.float32)
    for ci in range(Cin):
        # (Ch,1) weight column  *  (1,HW) input row  ->  (Ch,HW)
        acc = acc + w_exp[ci] * x[ci:ci + 1, :]
    h = _elu(acc + b_exp_ref[...])

    # ---- 3x3 depthwise conv (stride 1, pad 1) + bias + ELU ----
    # Stage h once in a lane-padded scratch (aligned stores); the 9 taps are
    # lane-dense shifted reads.  Row (y) borders are handled by the zero pads,
    # column (x) borders by cheap per-lane masks.
    pad_ref[:, :lane_pad] = jnp.zeros((Ch, lane_pad), jnp.float32)
    pad_ref[:, lane_pad + HW:] = jnp.zeros((Ch, lane_pad), jnp.float32)
    pad_ref[:, lane_pad:lane_pad + HW] = h

    col = lax.broadcasted_iota(jnp.int32, (1, HW), 1)
    if W & (W - 1) == 0:
        col = col & (W - 1)                          # column index = p % W
    else:
        col = col % W
    not_last_col = col < (W - 1)
    not_first_col = col > 0

    w_dw = w_dw_ref[...]                             # (9, Ch, 1), BN folded
    accd = jnp.zeros((Ch, HW), jnp.float32)
    t = 0
    for dy in (-1, 0, 1):
        for dx in (-1, 0, 1):
            s = dy * W + dx
            sh = pad_ref[:, lane_pad + s:lane_pad + s + HW]   # (Ch, HW)
            if dx == 1:
                sh = jnp.where(not_last_col, sh, 0.0)
            elif dx == -1:
                sh = jnp.where(not_first_col, sh, 0.0)
            accd = accd + w_dw[t] * sh
            t += 1
    d = _elu(accd + b_dw_ref[...])

    # ---- 1x1 projection conv (BN scale pre-folded) + bias, no activation ----
    w_proj = w_proj_ref[...]                         # (Ch, Cout, 1)
    accp = jnp.zeros((Cout, HW), jnp.float32)
    for c in range(Ch):
        accp = accp + w_proj[c] * d[c:c + 1, :]
    p = accp + b_proj_ref[...]

    if use_res_connect:
        p = p + x

    o_ref[0] = p.astype(o_ref.dtype)


def inverted_residual_pallas(x_cl, params, *, H, W, use_res_connect):
    """x_cl: (N, Cin, H*W) float32 — channels on sublanes, spatial on lanes."""
    N, Cin, HW = x_cl.shape
    assert HW == H * W
    Ch = params["b_dw"].shape[0]
    Cout = params["b_proj"].shape[0]
    LANE_PAD = 128   # keep the h staging store lane-aligned

    kernel = functools.partial(
        _inverted_residual_kernel,
        H=H, W=W, lane_pad=LANE_PAD, use_res_connect=use_res_connect,
    )

    grid_spec = pltpu.PrefetchScalarGridSpec(
        num_scalar_prefetch=0,
        grid=(N,),
        in_specs=[
            pl.BlockSpec((1, Cin, HW), lambda n: (n, 0, 0)),     # x
            pl.BlockSpec((Cin, Ch, 1), lambda n: (0, 0, 0)),     # w_exp (folded)
            pl.BlockSpec((Ch, 1), lambda n: (0, 0)),             # b_exp
            pl.BlockSpec((9, Ch, 1), lambda n: (0, 0, 0)),       # w_dw  (folded)
            pl.BlockSpec((Ch, 1), lambda n: (0, 0)),             # b_dw
            pl.BlockSpec((Ch, Cout, 1), lambda n: (0, 0, 0)),    # w_proj (folded)
            pl.BlockSpec((Cout, 1), lambda n: (0, 0)),           # b_proj
        ],
        out_specs=pl.BlockSpec((1, Cout, HW), lambda n: (n, 0, 0)),
        scratch_shapes=[pltpu.VMEM((Ch, HW + 2 * LANE_PAD), jnp.float32)],
    )

    return pl.pallas_call(
        kernel,
        out_shape=jax.ShapeDtypeStruct((N, Cout, HW), jnp.float32),
        grid_spec=grid_spec,
        compiler_params=pltpu.CompilerParams(
            dimension_semantics=("parallel",),
            vmem_limit_bytes=32 * 1024 * 1024,
        ),
    )(
        x_cl,
        params["w_exp"], params["b_exp"],
        params["w_dw"], params["b_dw"],
        params["w_proj"], params["b_proj"],
    )


def _fold_bn(gamma, beta, mean, var, eps=1e-5):
    s = gamma / jnp.sqrt(var + eps)
    b = beta - mean * s
    return s, b


def make_params(key, inp, oup, expand_ratio):
    """Deterministic synthetic weights (PyTorch shapes) -> kernel layouts.

    BN scales are folded into the conv weights for the kernel; the pure-JAX
    reference keeps conv weights and BN scale/bias separate to cross-check
    the folding.
    """
    hidden = int(round(inp * expand_ratio))
    ks = jax.random.split(key, 6)

    def bn_params(k, c):
        k0, k1, k2, k3 = jax.random.split(k, 4)
        gamma = 1.0 + 0.1 * jax.random.normal(k0, (c,), jnp.float32)
        beta = 0.1 * jax.random.normal(k1, (c,), jnp.float32)
        mean = 0.1 * jax.random.normal(k2, (c,), jnp.float32)
        var = jax.random.uniform(k3, (c,), jnp.float32, 0.5, 1.5)
        return gamma, beta, mean, var

    # torch-shaped conv weights
    w1 = 0.3 * jax.random.normal(ks[0], (hidden, inp, 1, 1), jnp.float32)   # expand
    w2 = 0.3 * jax.random.normal(ks[1], (hidden, 1, 3, 3), jnp.float32)     # depthwise
    w3 = 0.3 * jax.random.normal(ks[2], (oup, hidden, 1, 1), jnp.float32)   # project

    s1, b1 = _fold_bn(*bn_params(ks[3], hidden))
    s2, b2 = _fold_bn(*bn_params(ks[4], hidden))
    s3, b3 = _fold_bn(*bn_params(ks[5], oup))

    # --- kernel params: BN scale folded into weights, biases kept separately ---
    w_exp = jnp.transpose(w1[:, :, 0, 0] * s1[:, None], (1, 0))[:, :, None]     # (inp, hidden, 1)
    w_dw = jnp.transpose(
        (w2[:, 0, :, :] * s2[:, None, None]).reshape(hidden, 9), (1, 0)
    )[:, :, None]                                                               # (9, hidden, 1)
    w_proj = jnp.transpose(w3[:, :, 0, 0] * s3[:, None], (1, 0))[:, :, None]    # (hidden, oup, 1)

    params = dict(
        w_exp=w_exp, b_exp=b1[:, None],
        w_dw=w_dw, b_dw=b2[:, None],
        w_proj=w_proj, b_proj=b3[:, None],
    )
    # HWIO weights (un-folded) for the pure-JAX reference
    ref = dict(
        w_exp_hwio=jnp.transpose(w1, (2, 3, 1, 0)),             # (1,1,inp,hidden)
        w_dw_hwio=jnp.transpose(w2, (2, 3, 1, 0)),              # (3,3,1,hidden)
        w_proj_hwio=jnp.transpose(w3, (2, 3, 1, 0)),            # (1,1,hidden,oup)
        s1=s1, b1=b1, s2=s2, b2=b2, s3=s3, b3=b3,
    )
    return params, ref, hidden


def reference_forward(x_nhwc, ref, hidden, use_res_connect):
    dn = ("NHWC", "HWIO", "NHWC")
    y = lax.conv_general_dilated(x_nhwc, ref["w_exp_hwio"], (1, 1), "VALID",
                                 dimension_numbers=dn)
    y = _elu(y * ref["s1"] + ref["b1"])
    y = lax.conv_general_dilated(y, ref["w_dw_hwio"], (1, 1),
                                 ((1, 1), (1, 1)), dimension_numbers=dn,
                                 feature_group_count=hidden)
    y = _elu(y * ref["s2"] + ref["b2"])
    y = lax.conv_general_dilated(y, ref["w_proj_hwio"], (1, 1), "VALID",
                                 dimension_numbers=dn)
    y = y * ref["s3"] + ref["b3"]
    return x_nhwc + y if use_res_connect else y


if __name__ == "__main__":
    # Module config: InvertedResidual(inp=4, oup=4, stride=1, expand_ratio=2)
    # TODO(synk): stride=2 and expand_ratio=1 InvertedResidual variants (no
    # residual / no expand conv) are not implemented in this kernel.
    inp, oup, stride, expand_ratio = 4, 4, 1, 2
    use_res_connect = (stride == 1) and (inp == oup)

    N, H, W = 2, 16, 16
    key = jax.random.PRNGKey(0)
    kx, kp = jax.random.split(key)
    x_nchw = jax.random.normal(kx, (N, inp, H, W), jnp.float32)   # PyTorch layout

    params, ref_w, hidden = make_params(kp, inp, oup, expand_ratio)

    # kernel layout: (N, C, H*W) — channels on sublanes, flattened spatial on lanes
    x_cl = x_nchw.reshape(N, inp, H * W)
    out_cl = inverted_residual_pallas(x_cl, params, H=H, W=W,
                                      use_res_connect=use_res_connect)
    out_cl = jax.block_until_ready(out_cl)
    out_nchw = out_cl.reshape(N, oup, H, W)

    # pure-JAX reference (un-folded BN) in NHWC
    x_nhwc = jnp.transpose(x_nchw, (0, 2, 3, 1))
    ref_nhwc = reference_forward(x_nhwc, ref_w, hidden, use_res_connect)
    ref_nchw = jnp.transpose(ref_nhwc, (0, 3, 1, 2))

    err = float(jnp.max(jnp.abs(out_nchw - ref_nchw)))
    scale = 1.0 + float(jnp.max(jnp.abs(ref_nchw)))
    assert err < 1e-2 * scale, f"mismatch: max abs err {err}"

    print("KERNEL_OK")
</pallas_src>

<mosaic_0001>
module attributes {stable_mosaic.version = 11 : i64} {
  func.func @_inverted_residual_kernel(%arg0: i32, %arg1: memref<1x4x256xf32, #tpu.memory_space<vmem>>, %arg2: memref<4x8x1xf32, #tpu.memory_space<vmem>>, %arg3: memref<8x1xf32, #tpu.memory_space<vmem>>, %arg4: memref<9x8x1xf32, #tpu.memory_space<vmem>>, %arg5: memref<8x1xf32, #tpu.memory_space<vmem>>, %arg6: memref<8x4x1xf32, #tpu.memory_space<vmem>>, %arg7: memref<4x1xf32, #tpu.memory_space<vmem>>, %arg8: memref<1x4x256xf32, #tpu.memory_space<vmem>>, %arg9: memref<8x512xf32, #tpu.memory_space<vmem>>) attributes {dimension_semantics = [#tpu.dimension_semantics<parallel>], iteration_bounds = array<i64: 2>, scalar_prefetch = 0 : i64, scratch_operands = 1 : i64, tpu.core_type = #tpu.core_type<tc>, window_params = [{transform_indices = @transform_0, window_bounds = array<i64: 1, 4, 256>}, {pipeline_mode = #tpu.pipeline_mode<synchronous>, transform_indices = @transform_1, window_bounds = array<i64: 4, 8, 1>}, {pipeline_mode = #tpu.pipeline_mode<synchronous>, transform_indices = @transform_2, window_bounds = array<i64: 8, 1>}, {pipeline_mode = #tpu.pipeline_mode<synchronous>, transform_indices = @transform_3, window_bounds = array<i64: 9, 8, 1>}, {pipeline_mode = #tpu.pipeline_mode<synchronous>, transform_indices = @transform_4, window_bounds = array<i64: 8, 1>}, {pipeline_mode = #tpu.pipeline_mode<synchronous>, transform_indices = @transform_5, window_bounds = array<i64: 8, 4, 1>}, {pipeline_mode = #tpu.pipeline_mode<synchronous>, transform_indices = @transform_6, window_bounds = array<i64: 4, 1>}, {transform_indices = @transform_7, window_bounds = array<i64: 1, 4, 256>}]} {
    %c0 = arith.constant 0 : index
    %c0_0 = arith.constant 0 : index
    %c0_1 = arith.constant 0 : index
    %0 = vector.load %arg1[%c0, %c0_0, %c0_1] : memref<1x4x256xf32, #tpu.memory_space<vmem>>, vector<1x4x256xf32>
    %1 = vector.shape_cast %0 : vector<1x4x256xf32> to vector<4x256xf32>
    %c0_2 = arith.constant 0 : index
    %c0_3 = arith.constant 0 : index
    %c0_4 = arith.constant 0 : index
    %2 = vector.load %arg2[%c0_2, %c0_3, %c0_4] : memref<4x8x1xf32, #tpu.memory_space<vmem>>, vector<4x8x1xf32>
    %cst = arith.constant 0.000000e+00 : f32
    %3 = vector.broadcast %cst : f32 to vector<8x256xf32>
    %4 = vector.extract_strided_slice %2 {offsets = [0, 0, 0], sizes = [1, 8, 1], strides = [1, 1, 1]} : vector<4x8x1xf32> to vector<1x8x1xf32>
    %5 = vector.shape_cast %4 : vector<1x8x1xf32> to vector<8x1xf32>
    %6 = vector.extract_strided_slice %1 {offsets = [0, 0], sizes = [1, 256], strides = [1, 1]} : vector<4x256xf32> to vector<1x256xf32>
    %7 = vector.broadcast %5 : vector<8x1xf32> to vector<8x256xf32>
    %8 = vector.broadcast %6 : vector<1x256xf32> to vector<8x256xf32>
    %9 = arith.mulf %7, %8 : vector<8x256xf32>
    %10 = arith.addf %3, %9 : vector<8x256xf32>
    %11 = vector.extract_strided_slice %2 {offsets = [1, 0, 0], sizes = [1, 8, 1], strides = [1, 1, 1]} : vector<4x8x1xf32> to vector<1x8x1xf32>
    %12 = vector.shape_cast %11 : vector<1x8x1xf32> to vector<8x1xf32>
    %13 = vector.extract_strided_slice %1 {offsets = [1, 0], sizes = [1, 256], strides = [1, 1]} : vector<4x256xf32> to vector<1x256xf32>
    %14 = vector.broadcast %12 : vector<8x1xf32> to vector<8x256xf32>
    %15 = vector.broadcast %13 : vector<1x256xf32> to vector<8x256xf32>
    %16 = arith.mulf %14, %15 : vector<8x256xf32>
    %17 = arith.addf %10, %16 : vector<8x256xf32>
    %18 = vector.extract_strided_slice %2 {offsets = [2, 0, 0], sizes = [1, 8, 1], strides = [1, 1, 1]} : vector<4x8x1xf32> to vector<1x8x1xf32>
    %19 = vector.shape_cast %18 : vector<1x8x1xf32> to vector<8x1xf32>
    %20 = vector.extract_strided_slice %1 {offsets = [2, 0], sizes = [1, 256], strides = [1, 1]} : vector<4x256xf32> to vector<1x256xf32>
    %21 = vector.broadcast %19 : vector<8x1xf32> to vector<8x256xf32>
    %22 = vector.broadcast %20 : vector<1x256xf32> to vector<8x256xf32>
    %23 = arith.mulf %21, %22 : vector<8x256xf32>
    %24 = arith.addf %17, %23 : vector<8x256xf32>
    %25 = vector.extract_strided_slice %2 {offsets = [3, 0, 0], sizes = [1, 8, 1], strides = [1, 1, 1]} : vector<4x8x1xf32> to vector<1x8x1xf32>
    %26 = vector.shape_cast %25 : vector<1x8x1xf32> to vector<8x1xf32>
    %27 = vector.extract_strided_slice %1 {offsets = [3, 0], sizes = [1, 256], strides = [1, 1]} : vector<4x256xf32> to vector<1x256xf32>
    %28 = vector.broadcast %26 : vector<8x1xf32> to vector<8x256xf32>
    %29 = vector.broadcast %27 : vector<1x256xf32> to vector<8x256xf32>
    %30 = arith.mulf %28, %29 : vector<8x256xf32>
    %31 = arith.addf %24, %30 : vector<8x256xf32>
    %c0_5 = arith.constant 0 : index
    %c0_6 = arith.constant 0 : index
    %32 = vector.load %arg3[%c0_5, %c0_6] : memref<8x1xf32, #tpu.memory_space<vmem>>, vector<8x1xf32>
    %33 = vector.broadcast %32 : vector<8x1xf32> to vector<8x256xf32>
    %34 = arith.addf %31, %33 : vector<8x256xf32>
    %cst_7 = arith.constant 0.000000e+00 : f32
    %35 = vector.broadcast %cst_7 : f32 to vector<8x256xf32>
    %36 = arith.cmpf ogt, %34, %35 : vector<8x256xf32>
    %cst_8 = arith.constant 0.000000e+00 : f32
    %37 = vector.broadcast %cst_8 : f32 to vector<8x256xf32>
    %38 = arith.minimumf %34, %37 : vector<8x256xf32>
    %39 = math.exp %38 : vector<8x256xf32>
    %cst_9 = arith.constant 1.000000e+00 : f32
    %40 = vector.broadcast %cst_9 : f32 to vector<8x256xf32>
    %41 = arith.subf %39, %40 : vector<8x256xf32>
    %42 = arith.select %36, %34, %41 : vector<8x256xi1>, vector<8x256xf32>
    %cst_10 = arith.constant 0.000000e+00 : f32
    %43 = vector.broadcast %cst_10 : f32 to vector<8x128xf32>
    %c0_11 = arith.constant 0 : index
    %c0_12 = arith.constant 0 : index
    %44 = vector.load %arg9[%c0_11, %c0_12] : memref<8x512xf32, #tpu.memory_space<vmem>>, vector<8x128xf32>
    tpu.vector_store %arg9[%c0_11, %c0_12], %43 {strides = array<i32>} : memref<8x512xf32, #tpu.memory_space<vmem>>, vector<8x128xf32>,
    %cst_13 = arith.constant 0.000000e+00 : f32
    %45 = vector.broadcast %cst_13 : f32 to vector<8x128xf32>
    %c0_14 = arith.constant 0 : index
    %c384 = arith.constant 384 : index
    %46 = vector.load %arg9[%c0_14, %c384] : memref<8x512xf32, #tpu.memory_space<vmem>>, vector<8x128xf32>
    tpu.vector_store %arg9[%c0_14, %c384], %45 {strides = array<i32>} : memref<8x512xf32, #tpu.memory_space<vmem>>, vector<8x128xf32>,
    %c0_15 = arith.constant 0 : index
    %c128 = arith.constant 128 : index
    %47 = vector.load %arg9[%c0_15, %c128] : memref<8x512xf32, #tpu.memory_space<vmem>>, vector<8x256xf32>
    tpu.vector_store %arg9[%c0_15, %c128], %42 {strides = array<i32>} : memref<8x512xf32, #tpu.memory_space<vmem>>, vector<8x256xf32>,
    %48 = tpu.iota {dimensions = array<i32: 1>} : vector<1x256xi32>
    %c15_i32 = arith.constant 15 : i32
    %49 = vector.broadcast %c15_i32 : i32 to vector<1x256xi32>
    %50 = arith.andi %48, %49 : vector<1x256xi32>
    %c15_i32_16 = arith.constant 15 : i32
    %51 = vector.broadcast %c15_i32_16 : i32 to vector<1x256xi32>
    %52 = arith.cmpi slt, %50, %51 : vector<1x256xi32>
    %c0_i32 = arith.constant 0 : i32
    %53 = vector.broadcast %c0_i32 : i32 to vector<1x256xi32>
    %54 = arith.cmpi sgt, %50, %53 : vector<1x256xi32>
    %c0_17 = arith.constant 0 : index
    %c0_18 = arith.constant 0 : index
    %c0_19 = arith.constant 0 : index
    %55 = vector.load %arg4[%c0_17, %c0_18, %c0_19] : memref<9x8x1xf32, #tpu.memory_space<vmem>>, vector<9x8x1xf32>
    %cst_20 = arith.constant 0.000000e+00 : f32
    %56 = vector.broadcast %cst_20 : f32 to vector<8x256xf32>
    %c0_21 = arith.constant 0 : index
    %c111 = arith.constant 111 : index
    %57 = vector.load %arg9[%c0_21, %c111] : memref<8x512xf32, #tpu.memory_space<vmem>>, vector<8x256xf32>
    %cst_22 = arith.constant 0.000000e+00 : f32
    %58 = vector.shape_cast %54 : vector<1x256xi1> to vector<1x256xi1>
    %59 = vector.broadcast %58 : vector<1x256xi1> to vector<8x256xi1>
    %60 = vector.broadcast %cst_22 : f32 to vector<8x256xf32>
    %61 = arith.select %59, %57, %60 : vector<8x256xi1>, vector<8x256xf32>
    %62 = vector.extract_strided_slice %55 {offsets = [0, 0, 0], sizes = [1, 8, 1], strides = [1, 1, 1]} : vector<9x8x1xf32> to vector<1x8x1xf32>
    %63 = vector.shape_cast %62 : vector<1x8x1xf32> to vector<8x1xf32>
    %64 = vector.broadcast %63 : vector<8x1xf32> to vector<8x256xf32>
    %65 = arith.mulf %64, %61 : vector<8x256xf32>
    %66 = arith.addf %56, %65 : vector<8x256xf32>
    %c0_23 = arith.constant 0 : index
    %c112 = arith.constant 112 : index
    %67 = vector.load %arg9[%c0_23, %c112] : memref<8x512xf32, #tpu.memory_space<vmem>>, vector<8x256xf32>
    %68 = vector.extract_strided_slice %55 {offsets = [1, 0, 0], sizes = [1, 8, 1], strides = [1, 1, 1]} : vector<9x8x1xf32> to vector<1x8x1xf32>
    %69 = vector.shape_cast %68 : vector<1x8x1xf32> to vector<8x1xf32>
    %70 = vector.broadcast %69 : vector<8x1xf32> to vector<8x256xf32>
    %71 = arith.mulf %70, %67 : vector<8x256xf32>
    %72 = arith.addf %66, %71 : vector<8x256xf32>
    %c0_24 = arith.constant 0 : index
    %c113 = arith.constant 113 : index
    %73 = vector.load %arg9[%c0_24, %c113] : memref<8x512xf32, #tpu.memory_space<vmem>>, vector<8x256xf32>
    %cst_25 = arith.constant 0.000000e+00 : f32
    %74 = vector.shape_cast %52 : vector<1x256xi1> to vector<1x256xi1>
    %75 = vector.broadcast %74 : vector<1x256xi1> to vector<8x256xi1>
    %76 = vector.broadcast %cst_25 : f32 to vector<8x256xf32>
    %77 = arith.select %75, %73, %76 : vector<8x256xi1>, vector<8x256xf32>
    %78 = vector.extract_strided_slice %55 {offsets = [2, 0, 0], sizes = [1, 8, 1], strides = [1, 1, 1]} : vector<9x8x1xf32> to vector<1x8x1xf32>
    %79 = vector.shape_cast %78 : vector<1x8x1xf32> to vector<8x1xf32>
    %80 = vector.broadcast %79 : vector<8x1xf32> to vector<8x256xf32>
    %81 = arith.mulf %80, %77 : vector<8x256xf32>
    %82 = arith.addf %72, %81 : vector<8x256xf32>
    %c0_26 = arith.constant 0 : index
    %c127 = arith.constant 127 : index
    %83 = vector.load %arg9[%c0_26, %c127] : memref<8x512xf32, #tpu.memory_space<vmem>>, vector<8x256xf32>
    %cst_27 = arith.constant 0.000000e+00 : f32
    %84 = vector.shape_cast %54 : vector<1x256xi1> to vector<1x256xi1>
    %85 = vector.broadcast %84 : vector<1x256xi1> to vector<8x256xi1>
    %86 = vector.broadcast %cst_27 : f32 to vector<8x256xf32>
    %87 = arith.select %85, %83, %86 : vector<8x256xi1>, vector<8x256xf32>
    %88 = vector.extract_strided_slice %55 {offsets = [3, 0, 0], sizes = [1, 8, 1], strides = [1, 1, 1]} : vector<9x8x1xf32> to vector<1x8x1xf32>
    %89 = vector.shape_cast %88 : vector<1x8x1xf32> to vector<8x1xf32>
    %90 = vector.broadcast %89 : vector<8x1xf32> to vector<8x256xf32>
    %91 = arith.mulf %90, %87 : vector<8x256xf32>
    %92 = arith.addf %82, %91 : vector<8x256xf32>
    %c0_28 = arith.constant 0 : index
    %c128_29 = arith.constant 128 : index
    %93 = vector.load %arg9[%c0_28, %c128_29] : memref<8x512xf32, #tpu.memory_space<vmem>>, vector<8x256xf32>
    %94 = vector.extract_strided_slice %55 {offsets = [4, 0, 0], sizes = [1, 8, 1], strides = [1, 1, 1]} : vector<9x8x1xf32> to vector<1x8x1xf32>
    %95 = vector.shape_cast %94 : vector<1x8x1xf32> to vector<8x1xf32>
    %96 = vector.broadcast %95 : vector<8x1xf32> to vector<8x256xf32>
    %97 = arith.mulf %96, %93 : vector<8x256xf32>
    %98 = arith.addf %92, %97 : vector<8x256xf32>
    %c0_30 = arith.constant 0 : index
    %c129 = arith.constant 129 : index
    %99 = vector.load %arg9[%c0_30, %c129] : memref<8x512xf32, #tpu.memory_space<vmem>>, vector<8x256xf32>
    %cst_31 = arith.constant 0.000000e+00 : f32
    %100 = vector.shape_cast %52 : vector<1x256xi1> to vector<1x256xi1>
    %101 = vector.broadcast %100 : vector<1x256xi1> to vector<8x256xi1>
    %102 = vector.broadcast %cst_31 : f32 to vector<8x256xf32>
    %103 = arith.select %101, %99, %102 : vector<8x256xi1>, vector<8x256xf32>
    %104 = vector.extract_strided_slice %55 {offsets = [5, 0, 0], sizes = [1, 8, 1], strides = [1, 1, 1]} : vector<9x8x1xf32> to vector<1x8x1xf32>
    %105 = vector.shape_cast %104 : vector<1x8x1xf32> to vector<8x1xf32>
    %106 = vector.broadcast %105 : vector<8x1xf32> to vector<8x256xf32>
    %107 = arith.mulf %106, %103 : vector<8x256xf32>
    %108 = arith.addf %98, %107 : vector<8x256xf32>
    %c0_32 = arith.constant 0 : index
    %c143 = arith.constant 143 : index
    %109 = vector.load %arg9[%c0_32, %c143] : memref<8x512xf32, #tpu.memory_space<vmem>>, vector<8x256xf32>
    %cst_33 = arith.constant 0.000000e+00 : f32
    %110 = vector.shape_cast %54 : vector<1x256xi1> to vector<1x256xi1>
    %111 = vector.broadcast %110 : vector<1x256xi1> to vector<8x256xi1>
    %112 = vector.broadcast %cst_33 : f32 to vector<8x256xf32>
    %113 = arith.select %111, %109, %112 : vector<8x256xi1>, vector<8x256xf32>
    %114 = vector.extract_strided_slice %55 {offsets = [6, 0, 0], sizes = [1, 8, 1], strides = [1, 1, 1]} : vector<9x8x1xf32> to vector<1x8x1xf32>
    %115 = vector.shape_cast %114 : vector<1x8x1xf32> to vector<8x1xf32>
    %116 = vector.broadcast %115 : vector<8x1xf32> to vector<8x256xf32>
    %117 = arith.mulf %116, %113 : vector<8x256xf32>
    %118 = arith.addf %108, %117 : vector<8x256xf32>
    %c0_34 = arith.constant 0 : index
    %c144 = arith.constant 144 : index
    %119 = vector.load %arg9[%c0_34, %c144] : memref<8x512xf32, #tpu.memory_space<vmem>>, vector<8x256xf32>
    %120 = vector.extract_strided_slice %55 {offsets = [7, 0, 0], sizes = [1, 8, 1], strides = [1, 1, 1]} : vector<9x8x1xf32> to vector<1x8x1xf32>
    %121 = vector.shape_cast %120 : vector<1x8x1xf32> to vector<8x1xf32>
    %122 = vector.broadcast %121 : vector<8x1xf32> to vector<8x256xf32>
    %123 = arith.mulf %122, %119 : vector<8x256xf32>
    %124 = arith.addf %118, %123 : vector<8x256xf32>
    %c0_35 = arith.constant 0 : index
    %c145 = arith.constant 145 : index
    %125 = vector.load %arg9[%c0_35, %c145] : memref<8x512xf32, #tpu.memory_space<vmem>>, vector<8x256xf32>
    %cst_36 = arith.constant 0.000000e+00 : f32
    %126 = vector.shape_cast %52 : vector<1x256xi1> to vector<1x256xi1>
    %127 = vector.broadcast %126 : vector<1x256xi1> to vector<8x256xi1>
    %128 = vector.broadcast %cst_36 : f32 to vector<8x256xf32>
    %129 = arith.select %127, %125, %128 : vector<8x256xi1>, vector<8x256xf32>
    %130 = vector.extract_strided_slice %55 {offsets = [8, 0, 0], sizes = [1, 8, 1], strides = [1, 1, 1]} : vector<9x8x1xf32> to vector<1x8x1xf32>
    %131 = vector.shape_cast %130 : vector<1x8x1xf32> to vector<8x1xf32>
    %132 = vector.broadcast %131 : vector<8x1xf32> to vector<8x256xf32>
    %133 = arith.mulf %132, %129 : vector<8x256xf32>
    %134 = arith.addf %124, %133 : vector<8x256xf32>
    %c0_37 = arith.constant 0 : index
    %c0_38 = arith.constant 0 : index
    %135 = vector.load %arg5[%c0_37, %c0_38] : memref<8x1xf32, #tpu.memory_space<vmem>>, vector<8x1xf32>
    %136 = vector.broadcast %135 : vector<8x1xf32> to vector<8x256xf32>
    %137 = arith.addf %134, %136 : vector<8x256xf32>
    %cst_39 = arith.constant 0.000000e+00 : f32
    %138 = vector.broadcast %cst_39 : f32 to vector<8x256xf32>
    %139 = arith.cmpf ogt, %137, %138 : vector<8x256xf32>
    %cst_40 = arith.constant 0.000000e+00 : f32
    %140 = vector.broadcast %cst_40 : f32 to vector<8x256xf32>
    %141 = arith.minimumf %137, %140 : vector<8x256xf32>
    %142 = math.exp %141 : vector<8x256xf32>
    %cst_41 = arith.constant 1.000000e+00 : f32
    %143 = vector.broadcast %cst_41 : f32 to vector<8x256xf32>
    %144 = arith.subf %142, %143 : vector<8x256xf32>
    %145 = arith.select %139, %137, %144 : vector<8x256xi1>, vector<8x256xf32>
    %c0_42 = arith.constant 0 : index
    %c0_43 = arith.constant 0 : index
    %c0_44 = arith.constant 0 : index
    %146 = vector.load %arg6[%c0_42, %c0_43, %c0_44] : memref<8x4x1xf32, #tpu.memory_space<vmem>>, vector<8x4x1xf32>
    %cst_45 = arith.constant 0.000000e+00 : f32
    %147 = vector.broadcast %cst_45 : f32 to vector<4x256xf32>
    %148 = vector.extract_strided_slice %146 {offsets = [0, 0, 0], sizes = [1, 4, 1], strides = [1, 1, 1]} : vector<8x4x1xf32> to vector<1x4x1xf32>
    %149 = vector.shape_cast %148 : vector<1x4x1xf32> to vector<4x1xf32>
    %150 = vector.extract_strided_slice %145 {offsets = [0, 0], sizes = [1, 256], strides = [1, 1]} : vector<8x256xf32> to vector<1x256xf32>
    %151 = vector.broadcast %149 : vector<4x1xf32> to vector<4x256xf32>
    %152 = vector.broadcast %150 : vector<1x256xf32> to vector<4x256xf32>
    %153 = arith.mulf %151, %152 : vector<4x256xf32>
    %154 = arith.addf %147, %153 : vector<4x256xf32>
    %155 = vector.extract_strided_slice %146 {offsets = [1, 0, 0], sizes = [1, 4, 1], strides = [1, 1, 1]} : vector<8x4x1xf32> to vector<1x4x1xf32>
    %156 = vector.shape_cast %155 : vector<1x4x1xf32> to vector<4x1xf32>
    %157 = vector.extract_strided_slice %145 {offsets = [1, 0], sizes = [1, 256], strides = [1, 1]} : vector<8x256xf32> to vector<1x256xf32>
    %158 = vector.broadcast %156 : vector<4x1xf32> to vector<4x256xf32>
    %159 = vector.broadcast %157 : vector<1x256xf32> to vector<4x256xf32>
    %160 = arith.mulf %158, %159 : vector<4x256xf32>
    %161 = arith.addf %154, %160 : vector<4x256xf32>
    %162 = vector.extract_strided_slice %146 {offsets = [2, 0, 0], sizes = [1, 4, 1], strides = [1, 1, 1]} : vector<8x4x1xf32> to vector<1x4x1xf32>
    %163 = vector.shape_cast %162 : vector<1x4x1xf32> to vector<4x1xf32>
    %164 = vector.extract_strided_slice %145 {offsets = [2, 0], sizes = [1, 256], strides = [1, 1]} : vector<8x256xf32> to vector<1x256xf32>
    %165 = vector.broadcast %163 : vector<4x1xf32> to vector<4x256xf32>
    %166 = vector.broadcast %164 : vector<1x256xf32> to vector<4x256xf32>
    %167 = arith.mulf %165, %166 : vector<4x256xf32>
    %168 = arith.addf %161, %167 : vector<4x256xf32>
    %169 = vector.extract_strided_slice %146 {offsets = [3, 0, 0], sizes = [1, 4, 1], strides = [1, 1, 1]} : vector<8x4x1xf32> to vector<1x4x1xf32>
    %170 = vector.shape_cast %169 : vector<1x4x1xf32> to vector<4x1xf32>
    %171 = vector.extract_strided_slice %145 {offsets = [3, 0], sizes = [1, 256], strides = [1, 1]} : vector<8x256xf32> to vector<1x256xf32>
    %172 = vector.broadcast %170 : vector<4x1xf32> to vector<4x256xf32>
    %173 = vector.broadcast %171 : vector<1x256xf32> to vector<4x256xf32>
    %174 = arith.mulf %172, %173 : vector<4x256xf32>
    %175 = arith.addf %168, %174 : vector<4x256xf32>
    %176 = vector.extract_strided_slice %146 {offsets = [4, 0, 0], sizes = [1, 4, 1], strides = [1, 1, 1]} : vector<8x4x1xf32> to vector<1x4x1xf32>
    %177 = vector.shape_cast %176 : vector<1x4x1xf32> to vector<4x1xf32>
    %178 = vector.extract_strided_slice %145 {offsets = [4, 0], sizes = [1, 256], strides = [1, 1]} : vector<8x256xf32> to vector<1x256xf32>
    %179 = vector.broadcast %177 : vector<4x1xf32> to vector<4x256xf32>
    %180 = vector.broadcast %178 : vector<1x256xf32> to vector<4x256xf32>
    %181 = arith.mulf %179, %180 : vector<4x256xf32>
    %182 = arith.addf %175, %181 : vector<4x256xf32>
    %183 = vector.extract_strided_slice %146 {offsets = [5, 0, 0], sizes = [1, 4, 1], strides = [1, 1, 1]} : vector<8x4x1xf32> to vector<1x4x1xf32>
    %184 = vector.shape_cast %183 : vector<1x4x1xf32> to vector<4x1xf32>
    %185 = vector.extract_strided_slice %145 {offsets = [5, 0], sizes = [1, 256], strides = [1, 1]} : vector<8x256xf32> to vector<1x256xf32>
    %186 = vector.broadcast %184 : vector<4x1xf32> to vector<4x256xf32>
    %187 = vector.broadcast %185 : vector<1x256xf32> to vector<4x256xf32>
    %188 = arith.mulf %186, %187 : vector<4x256xf32>
    %189 = arith.addf %182, %188 : vector<4x256xf32>
    %190 = vector.extract_strided_slice %146 {offsets = [6, 0, 0], sizes = [1, 4, 1], strides = [1, 1, 1]} : vector<8x4x1xf32> to vector<1x4x1xf32>
    %191 = vector.shape_cast %190 : vector<1x4x1xf32> to vector<4x1xf32>
    %192 = vector.extract_strided_slice %145 {offsets = [6, 0], sizes = [1, 256], strides = [1, 1]} : vector<8x256xf32> to vector<1x256xf32>
    %193 = vector.broadcast %191 : vector<4x1xf32> to vector<4x256xf32>
    %194 = vector.broadcast %192 : vector<1x256xf32> to vector<4x256xf32>
    %195 = arith.mulf %193, %194 : vector<4x256xf32>
    %196 = arith.addf %189, %195 : vector<4x256xf32>
    %197 = vector.extract_strided_slice %146 {offsets = [7, 0, 0], sizes = [1, 4, 1], strides = [1, 1, 1]} : vector<8x4x1xf32> to vector<1x4x1xf32>
    %198 = vector.shape_cast %197 : vector<1x4x1xf32> to vector<4x1xf32>
    %199 = vector.extract_strided_slice %145 {offsets = [7, 0], sizes = [1, 256], strides = [1, 1]} : vector<8x256xf32> to vector<1x256xf32>
    %200 = vector.broadcast %198 : vector<4x1xf32> to vector<4x256xf32>
    %201 = vector.broadcast %199 : vector<1x256xf32> to vector<4x256xf32>
    %202 = arith.mulf %200, %201 : vector<4x256xf32>
    %203 = arith.addf %196, %202 : vector<4x256xf32>
    %c0_46 = arith.constant 0 : index
    %c0_47 = arith.constant 0 : index
    %204 = vector.load %arg7[%c0_46, %c0_47] : memref<4x1xf32, #tpu.memory_space<vmem>>, vector<4x1xf32>
    %205 = vector.broadcast %204 : vector<4x1xf32> to vector<4x256xf32>
    %206 = arith.addf %203, %205 : vector<4x256xf32>
    %207 = arith.addf %206, %1 : vector<4x256xf32>
    %c0_48 = arith.constant 0 : index
    %c0_49 = arith.constant 0 : index
    %c0_50 = arith.constant 0 : index
    %208 = vector.load %arg8[%c0_48, %c0_49, %c0_50] : memref<1x4x256xf32, #tpu.memory_space<vmem>>, vector<1x4x256xf32>
    %209 = vector.shape_cast %208 : vector<1x4x256xf32> to vector<4x256xf32>
    %210 = vector.shape_cast %207 : vector<4x256xf32> to vector<1x4x256xf32>
    tpu.vector_store %arg8[%c0_48, %c0_49, %c0_50], %210 {strides = array<i32>} : memref<1x4x256xf32, #tpu.memory_space<vmem>>, vector<1x4x256xf32>,
    return
  }
  func.func @transform_0(%arg0: i32) -> (i32, i32, i32) {
    %c0_i32 = arith.constant 0 : i32
    %c0_i32_0 = arith.constant 0 : i32
    %c0_i32_1 = arith.constant 0 : i32
    return %arg0, %c0_i32, %c0_i32_0 : i32, i32, i32
  }
  func.func @transform_1(%arg0: i32) -> (i32, i32, i32) {
    %c0_i32 = arith.constant 0 : i32
    %c0_i32_0 = arith.constant 0 : i32
    %c0_i32_1 = arith.constant 0 : i32
    %c0_i32_2 = arith.constant 0 : i32
    return %c0_i32, %c0_i32_0, %c0_i32_1 : i32, i32, i32
  }
  func.func @transform_2(%arg0: i32) -> (i32, i32) {
    %c0_i32 = arith.constant 0 : i32
    %c0_i32_0 = arith.constant 0 : i32
    %c0_i32_1 = arith.constant 0 : i32
    return %c0_i32, %c0_i32_0 : i32, i32
  }
  func.func @transform_3(%arg0: i32) -> (i32, i32, i32) {
    %c0_i32 = arith.constant 0 : i32
    %c0_i32_0 = arith.constant 0 : i32
    %c0_i32_1 = arith.constant 0 : i32
    %c0_i32_2 = arith.constant 0 : i32
    return %c0_i32, %c0_i32_0, %c0_i32_1 : i32, i32, i32
  }
  func.func @transform_4(%arg0: i32) -> (i32, i32) {
    %c0_i32 = arith.constant 0 : i32
    %c0_i32_0 = arith.constant 0 : i32
    %c0_i32_1 = arith.constant 0 : i32
    return %c0_i32, %c0_i32_0 : i32, i32
  }
  func.func @transform_5(%arg0: i32) -> (i32, i32, i32) {
    %c0_i32 = arith.constant 0 : i32
    %c0_i32_0 = arith.constant 0 : i32
    %c0_i32_1 = arith.constant 0 : i32
    %c0_i32_2 = arith.constant 0 : i32
    return %c0_i32, %c0_i32_0, %c0_i32_1 : i32, i32, i32
  }
  func.func @transform_6(%arg0: i32) -> (i32, i32) {
    %c0_i32 = arith.constant 0 : i32
    %c0_i32_0 = arith.constant 0 : i32
    %c0_i32_1 = arith.constant 0 : i32
    return %c0_i32, %c0_i32_0 : i32, i32
  }
  func.func @transform_7(%arg0: i32) -> (i32, i32, i32) {
    %c0_i32 = arith.constant 0 : i32
    %c0_i32_0 = arith.constant 0 : i32
    %c0_i32_1 = arith.constant 0 : i32
    return %arg0, %c0_i32, %c0_i32_0 : i32, i32, i32
  }
}

</mosaic_0001>

<bundles_post_ra>
// kernel: tpu_custom_call.1
= control target key start
LH: loop header
LB: loop body
LE: loop exit
PB: predicated region body
PF: predicated region fallthrough
CT: control target
= control target key end

     0   :  { %12 = vsyncpa [#allocation4], 0  ;;  %s1431_s0 = inlined_call_operand.vmem [shape: f32[2,4,256], index: 0, kind: input, shape index: {}]   ;;  %s1432_s1 = inlined_call_operand.vmem [shape: f32[4,8,1], index: 1, kind: input, shape index: {}]   ;;  %s1433_s2 = inlined_call_operand.vmem [shape: f32[8,1], index: 2, kind: input, shape index: {}]   ;;  %s1434_s3 = inlined_call_operand.vmem [shape: f32[9,8,1], index: 3, kind: input, shape index: {}]   ;;  %s1435_s4 = inlined_call_operand.vmem [shape: f32[8,1], index: 4, kind: input, shape index: {}]   ;;  %s1436_s5 = inlined_call_operand.vmem [shape: f32[8,4,1], index: 5, kind: input, shape index: {}]   ;;  %s1437_s6 = inlined_call_operand.vmem [shape: f32[4,1], index: 6, kind: input, shape index: {}]   ;;  %s1438_s7 = inlined_call_operand.hbm [shape: f32[2,4,256], index: 7, kind: output, shape index: {}]  }
   0x1   :  { %14 = vsyncpa [#allocation4 + $0x1], 0  ;;  %s1090_s24 = smov 0   ;;  %s1092_s25 = smov 0  }
   0x2   :  { %s1094_s26 = smov 0   ;;  %s1096_s27 = smov 0  }
   0x3 LB: > { %s1111_s28 = sadd.s32 4294967295, %s1037_s27   ;;  %s897_s29 = sadd.s32 4294967294, %s1037_s27   ;;  %s1037_s27 = sphi %s1096_s27, %s1452_s27   ;;  %s1033_s26 = sphi %s1094_s26, %s1451_s26   ;;  %s1029_s25 = sphi %s1092_s25, %s1450_s25   ;;  %s1025_s24 = sphi %s1090_s24, %s1449_s24  }
   0x4   : > { %s1115_s30 = sadd.s32 1, %s1037_s27   ;;  %s179_s8 = sadd.s32 1, %s1033_s26 }
   0x5   : > { %s176_s9 = ssub.s32 %s1037_s27, %s1115_s30  ;;  %p189_p0 = scmp.ne.s32.totalorder %s1033_s26, %s1029_s25 }
   0x6   : > { %p177_p1 = scmp.eq.s32.totalorder %s176_s9, 0  ;;  %p190_p2 = scmp.eq.s32.totalorder %s1111_s28, 1 }
   0x7   : > { %p195_p3 = scmp.ne.s32.totalorder %s1029_s25, %s1025_s24  ;;  %p196_p4 = scmp.eq.s32.totalorder %s897_s29, 1 }
   0x8   : > { %s1126_s10 = scalar_select %p177_p1, %s1033_s26, %s179_s8  }
   0x9   : > { %p1128_p5 = por %p190_p2, %p189_p0  ;;  %p1132_p6 = por %p196_p4, %p195_p3 }
   0xa   : > { %p900_p7 = scmp.ge.s32.totalorder %s1037_s27, 1  ;;  %p240_p8 = scmp.lt.s32.totalorder %s1037_s27, 3 }
   0xc   : > { %p241_p9 = pnand %p900_p7, %p240_p8 }
   0xd   : > { %v280_v0 = vld [vmem:[%s1432_s1 + $0x10] sm:$0xff] (!%p241_p9)  ;;  %v278_v1 = vld [vmem:[%s1432_s1] sm:$0xff] (!%p241_p9)  ;;  %v1039_v2 = vmov (!%p241_p9), 0   ;;  %v281_v3 = vld [vmem:[%s1432_s1 + $0x18] sm:$0xff] (!%p241_p9)  ;;  %v1040_v12 = vmov (!%p241_p9), 0.0   ;;  %s1041_s21 = smov (!%p241_p9), 17   ;;  %v288_v17 = vlaneseq (!%p241_p9) }
   0xe   : > { %244 = sbr.rel (%p241_p9) target bundleno = 387 (0x183), region = 48  ;;  %965 = vset.pattern.permute.xlu1 (!%p241_p9), %v1039_v2  ;;  %964 = vset.pattern.permute.xlu0 (!%p241_p9), %v1039_v2  ;;  %v279_v4 = vld [vmem:[%s1432_s1 + $0x8] sm:$0xff] (!%p241_p9)  ;;  %v391_v6 = vld [vmem:[%s1433_s2] sm:$0xff] (!%p241_p9)  ;;  %v431_v8 = vld [vmem:[%s1434_s3 + $0x38] sm:$0xff] (!%p241_p9)  ;;  %s1042_s22 = smov (!%p241_p9), 15   ;;  %vm449_vm2 = vcmask (!%p241_p9), 138240  }
   0xf   : > { %339 = vperm.xlu1 (!%p241_p9), %965, %v280_v0   ;;  %284 = vperm.xlu0 (!%p241_p9), %964, %v278_v1   ;;  %v425_v5 = vld [vmem:[%s1434_s3 + $0x8] sm:$0xff] (!%p241_p9)  ;;  %v424_v7 = vld [vmem:[%s1434_s3] sm:$0xff] (!%p241_p9)  ;;  %v427_v9 = vld [vmem:[%s1434_s3 + $0x18] sm:$0xff] (!%p241_p9)  ;;  %s1043_s23 = smov (!%p241_p9), 1   ;;  %s1044_s9 = smov (!%p241_p9), 127   ;;  %v289_v18 = vshrl.u32 (!%p241_p9), %v288_v17, 7 }
  0x10   : > { %v426_v10 = vld [vmem:[%s1434_s3 + $0x10] sm:$0xff] (!%p241_p9)  ;;  %v428_v11 = vld [vmem:[%s1434_s3 + $0x20] sm:$0xff] (!%p241_p9)  ;;  %v429_v13 = vld [vmem:[%s1434_s3 + $0x28] sm:$0xff] (!%p241_p9)  ;;  %s1045_s15 = smov (!%p241_p9), 113   ;;  %p272_p10 = scmp.lt.s32.totalorder (!%p241_p9), %s1111_s28, 1  ;;  %vm499_vm5 = vcmask (!%p241_p9), 121856  }
  0x11   : > { %v430_v14 = vld [vmem:[%s1434_s3 + $0x30] sm:$0xff] (!%p241_p9)  ;;  %v432_v15 = vld [vmem:[%s1434_s3 + $0x40] sm:$0xff] (!%p241_p9)  ;;  %v1199_v19 = vsub.s32 (!%p241_p9), 0, %v289_v18  ;;  %v1201_v20 = vsub.s32 (!%p241_p9), 4, %v289_v18  ;;  %v1203_v21 = vsub.s32 (!%p241_p9), 1, %v289_v18  ;;  %v1205_v22 = vsub.s32 (!%p241_p9), 5, %v289_v18 }
  0x12   : > { %v642_v16 = vld [vmem:[%s1435_s4] sm:$0xff] (!%p241_p9)  ;;  %v1209_v24 = vsub.s32 (!%p241_p9), 2, %v289_v18  ;;  %v1211_v25 = vsub.s32 (!%p241_p9), 6, %v289_v18  ;;  %v1213_v26 = vsub.s32 (!%p241_p9), 3, %v289_v18  ;;  %v1215_v27 = vsub.s32 (!%p241_p9), 7, %v289_v18  ;;  %s1046_s16 = smov (!%p241_p9), 16  }
  0x13   : > { %366 = vperm.xlu1 (!%p241_p9), %965, %v281_v3   ;;  %312 = vperm.xlu0 (!%p241_p9), %964, %v279_v4   ;;  %vm521_vm6 = vcmask (!%p241_p9), 7168   ;;  %vm558_vm9 = vcmask (!%p241_p9), 1039360   ;;  %vm482_vm10 = vcmask (!%p241_p9), 130048   ;;  %vm580_vm11 = vcmask (!%p241_p9), 924672   ;;  %s269_s18 = sand.u32 (!%p241_p9), 1, %s1029_s25  }
  0x14   : > { %vm626_vm12 = vcmask (!%p241_p9), 908288   ;;  %vm613_vm13 = vcmask (!%p241_p9), 916480   ;;  %s901_s19 = sshll.u32 (!%p241_p9), %s269_s18, 3 }
  0x15   : > { %s273_s20 = scalar_select %p272_p10, %s1111_s28, 1 }
  0x17   : > { %467 = vperm.xlu1 %965, %v425_v5   ;;  %394 = vperm.xlu0 %964, %v391_v6   ;;  %s913_s29 = sshll.u32 %s273_s20, 3  ;;  %s914_s20 = sshll.u32 %s1111_s28, 7 }
  0x18   : > { %s276_s14 = scalar_lea.vmem %s1431_s0, %s913_s29  ;;  %s271_s29 = scalar_lea.vmem [#allocation3], %s901_s19 }
  0x19   : > { %v1207_v23 = vld [vmem:[%s276_s14] sm:$0xff]  ;;  %s838_s8 = sshll.u32 %s271_s29, 4  ;;  %s1049_s28 = smov [#allocation3]   ;;  %s1391_s8 = int_to_ptr.vmem [resolvable:$true] %s838_s8 }
  0x1a   : > { %v291_v28 = vrot.slane %v1207_v23, %v1199_v19  ;;  %v295_v29 = vrot.slane %v1207_v23, %v1201_v20  ;;  %v318_v30 = vrot.slane %v1207_v23, %v1203_v21  ;;  %v322_v31 = vrot.slane %v1207_v23, %v1205_v22 }
  0x1b   : > { %458 = vperm.xlu1 %965, %v424_v7   ;;  %598 = vperm.xlu0 %964, %v431_v8   ;;  %v345_v32 = vrot.slane %v1207_v23, %v1209_v24  ;;  %v349_v33 = vrot.slane %v1207_v23, %v1211_v25  ;;  %v372_v36 = vrot.slane %v1207_v23, %v1213_v26 }
  0x1c   : > { %v376_v37 = vrot.slane %v1207_v23, %v1215_v27  ;;  %v301_v38 = vrot.slane %v291_v28, %v1199_v19  ;;  %v305_v39 = vrot.slane %v295_v29, %v1199_v19  ;;  %v328_v40 = vrot.slane %v318_v30, %v1203_v21  ;;  %v662_v30 = vld [vmem:[%s1436_s5] sm:$0xf] }
  0x1d   : > { %v332_v41 = vrot.slane %v322_v31, %v1203_v21  ;;  %v355_v42 = vrot.slane %v345_v32, %v1209_v24  ;;  %v359_v43 = vrot.slane %v349_v33, %v1209_v24  ;;  %v382_v45 = vrot.slane %v372_v36, %v1213_v26  ;;  %v663_v31 = vld [vmem:[%s1436_s5 + $0x4] sm:$0xf]  ;;  %v665_v32 = vld [vmem:[%s1436_s5 + $0xc] sm:$0xf]  ;;  %v666_v33 = vld [vmem:[%s1436_s5 + $0x10] sm:$0xf] }
  0x1e   : > { %v386_v46 = vrot.slane %v376_v37, %v1213_v26  ;;  %v669_v36 = vld [vmem:[%s1436_s5 + $0x1c] sm:$0xf]  ;;  %v806_v37 = vld [vmem:[%s1437_s6] sm:$0xf] }
  0x1f   : > { %530 = vperm.xlu1 %965, %v427_v9   ;;  %508 = vperm.xlu0 %964, %v426_v10  }
  0x23   : > { %539 = vperm.xlu1 %965, %v428_v11   ;;  %443 = vrot.lane.b32.xlu0 %v1040_v12, %s1041_s21 }
  0x27   : > { %493 = vrot.lane.b32.xlu0 %v1040_v12, %s1042_s22  ;;  %515 = vrot.lane.b32.xlu1 %v1040_v12, %s1043_s23 }
  0x2b   : > { %567 = vperm.xlu0 %964, %v429_v13   ;;  %556 = vrot.lane.b32.xlu1 %v1040_v12, %s1044_s9 }
  0x2f   : > { %589 = vperm.xlu0 %964, %v430_v14   ;;  %578 = vrot.lane.b32.xlu1 %v1040_v12, %s1045_s15 }
  0x33   : > { %635 = vperm.xlu0 %964, %v432_v15  }
  0x37   : > { %645 = vperm.xlu0 %964, %v642_v16  }
  0x8e   : > { %v340_v34 = vpop.permute.xlu1 %339  ;;  %v285_v35 = vpop.permute.xlu0 %284 }
  0x8f   : > { %v306_v48 = vmul.f32 %v301_v38, %v285_v35  ;;  %v307_v49 = vmul.f32 %v305_v39, %v285_v35  ;;  %v360_v52 = vmul.f32 %v355_v42, %v340_v34  ;;  %v361_v53 = vmul.f32 %v359_v43, %v340_v34  ;;  %v667_v34 = vld [vmem:[%s1436_s5 + $0x14] sm:$0xf]  ;;  %v668_v35 = vld [vmem:[%s1436_s5 + $0x18] sm:$0xf] }
  0x92   : > { %v367_v44 = vpop.permute.xlu1 %366  ;;  %v313_v47 = vpop.permute.xlu0 %312 }
  0x93   : > { %v333_v50 = vmul.f32 %v328_v40, %v313_v47  ;;  %v334_v51 = vmul.f32 %v332_v41, %v313_v47  ;;  %v387_v56 = vmul.f32 %v382_v45, %v367_v44  ;;  %v388_v58 = vmul.f32 %v386_v46, %v367_v44 }
  0x95   : > { %v335_v54 = vadd.f32 %v333_v50, %v306_v48  ;;  %v336_v55 = vadd.f32 %v334_v51, %v307_v49 }
  0x96   : > { %v468_v57 = vpop.permute.xlu1 %467  ;;  %v395_v0 = vpop.permute.xlu0 %394 }
  0x97   : > { %v470_v59 = vmul.f32 0.0, %v468_v57  ;;  %v362_v60 = vadd.f32 %v360_v52, %v335_v54  ;;  %v363_v61 = vadd.f32 %v361_v53, %v336_v55  ;;  %v416_v54 = vand.u32 127, %v288_v17 }
  0x99   : > { %v389_v62 = vadd.f32 %v387_v56, %v362_v60  ;;  %v390_v63 = vadd.f32 %v388_v58, %v363_v61  ;;  %476 = vrot.lane.b32.xlu1 %v470_v59, %s1046_s16  ;;  %v418_v59 = vand.u32 15, %v416_v54 }
  0x9a   : > { %v599_v16 = vpop.permute.xlu0 %598  ;;  %v459_v39 = vpop.permute.xlu1 %458 }
  0x9b   : > { %v397_v1 = vadd.f32 %v395_v0, %v389_v62  ;;  %v398_v2 = vadd.f32 %v395_v0, %v390_v63  ;;  %v603_v29 = vmul.f32 0.0, %v599_v16  ;;  %vm1313_vm3 = vcmp.gt.s32.totalorder %v418_v59, 0 }
  0x9c   : > { %vm1321_vm7 = vcmp.lt.s32.totalorder %v418_v59, 15 }
  0x9d   : > { %v401_v3 = vmin.f32 %v397_v1, 0.0  ;;  %v402_v4 = vmin.f32 %v398_v2, 0.0  ;;  %vm399_vm0 = vcmp.gt.f32.partialorder %v397_v1, 0.0  ;;  %vm400_vm1 = vcmp.gt.f32.partialorder %v398_v2, 0.0 }
  0x9e   : > { %v509_v38 = vpop.permute.xlu0 %508  ;;  %v531_v41 = vpop.permute.xlu1 %530 }
  0x9f   : > { %v403_v5 = vmul.f32 1.442695, %v401_v3  ;;  %v405_v6 = vmul.f32 1.442695, %v402_v4 }
  0xa1   : > { %967 = vpow2.f32 %v403_v5 }
  0xa2   : > { %969 = vpow2.f32 %v405_v6  ;;  %v444_v40 = vpop.permute.xlu0 %443  ;;  %v1302_v43 = vpop.permute.xlu1 %539 }
  0xa6   : > { %v494_v42 = vpop.permute.xlu0 %493  ;;  %v516_v44 = vpop.permute.xlu1 %515 }
  0xaa   : > { %v1304_v45 = vpop.permute.xlu0 %567  ;;  %v557_v46 = vpop.permute.xlu1 %556 }
  0xab   : > { %v968_v7 = vpop.eup %967 }
  0xac   : > { %v970_v8 = vpop.eup %969  ;;  %v904_v9 = vadd.f32 -1.0, %v968_v7 }
  0xad   : > { %v905_v10 = vadd.f32 -1.0, %v970_v8 }
  0xae   : > { %v1242_v11 = vsel %vm399_vm0, %v397_v1, %v904_v9  ;;  %v1306_v47 = vpop.permute.xlu0 %589  ;;  %v579_v48 = vpop.permute.xlu1 %578 }
  0xaf   : > { %v1244_v13 = vsel %vm400_vm1, %v398_v2, %v905_v10  ;;  %445 = vrot.lane.b32.xlu1 %v1242_v11, %s1041_s21  ;;  %v471_v15 = vmul.f32 %v468_v57, %v1242_v11  ;;  %v601_v18 = vmul.f32 %v599_v16, %v1242_v11 }
  0xb0   : > { %447 = vrot.lane.b32.xlu0 %v1244_v13, %s1041_s21  ;;  %v472_v14 = vmul.f32 %v468_v57, %v1244_v13  ;;  %s1047_s21 = smov 111   ;;  %v602_v28 = vmul.f32 %v599_v16, %v1244_v13  ;;  %v417_v57 = vadd.s32 128, %v416_v54 }
  0xb2   : > { %v1308_v49 = vpop.permute.xlu0 %635  ;;  %v419_v61 = vand.u32 15, %v417_v57 }
  0xb3   : > { %495 = vrot.lane.b32.xlu1 %v1242_v11, %s1042_s22 }
  0xb4   : > { %497 = vrot.lane.b32.xlu0 %v1244_v13, %s1042_s22  ;;  %s1048_s22 = smov 112   ;;  %vm1317_vm4 = vcmp.gt.s32.totalorder %v419_v61, 0  ;;  %vm1325_vm8 = vcmp.lt.s32.totalorder %v419_v61, 15 }
  0xb6   : > { %v1310_v51 = vpop.permute.xlu0 %645 }
  0xb7   : > { %519 = vrot.lane.b32.xlu1 %v1244_v13, %s1043_s23 }
  0xb8   : > { %517 = vrot.lane.b32.xlu0 %v1242_v11, %s1043_s23  ;;  %s979_s23 = sshll.u32 %s1049_s28, 4  ;;  %s980_s23 = int_to_ptr.vmem [resolvable:$false] %s979_s23 }
  0xb9   : > { %p982_p0 = scmp.lt.s32.totalorder %s1391_s8, %s980_s23 }
  0xbb   : > { %552 = vrot.lane.b32.xlu1 %v1242_v11, %s1044_s9 }
  0xbc   : > { %554 = vrot.lane.b32.xlu0 %v1244_v13, %s1044_s9  ;;  %s981_s9 = scalar_lea.vmem %s980_s23, 256 }
  0xbf   : > { %574 = vrot.lane.b32.xlu1 %v1242_v11, %s1045_s15 }
  0xc0   : > { %576 = vrot.lane.b32.xlu0 %v1244_v13, %s1045_s15 }
  0xc3   : > { %480 = vrot.lane.b32.xlu1 %v472_v14, %s1046_s16 }
  0xc4   : > { %478 = vrot.lane.b32.xlu0 %v471_v15, %s1046_s16  ;;  %s1389_s16 = scalar_lea.hbm %s1438_s7, %s914_s20 }
  0xc7   : > { %620 = vrot.lane.b32.xlu1 %v1242_v11, %s1047_s21 }
  0xc8   : > { %622 = vrot.lane.b32.xlu0 %v1244_v13, %s1047_s21 }
  0xcb   : > { %624 = vrot.lane.b32.xlu1 %v1040_v12, %s1047_s21  ;;  %v664_v12 = vld [vmem:[%s1436_s5 + $0x8] sm:$0xf]  ;;  %s824_s21 = scalar_lea.sflag [#allocation4], %s269_s18 }
  0xcc   : > { %607 = vrot.lane.b32.xlu0 %v601_v18, %s1048_s22 }
  0xcf   : > { %609 = vrot.lane.b32.xlu1 %v602_v28, %s1048_s22 }
  0xd0   : > { %611 = vrot.lane.b32.xlu0 %v603_v29, %s1048_s22  ;;  %s975_s22 = scalar_lea.vmem %s1391_s8, 128 }
  0xd1   : > { %p976_p11 = scmp.ne.s32.totalorder %s1391_s8, %s975_s22  ;;  %p983_p1 = scmp.lt.s32.totalorder %s981_s9, %s975_s22 }
  0xd3   : > { %672 = vperm.xlu1 %965, %v662_v30   ;;  %p977_p12 = pnand %p976_p11, %p1128_p5  ;;  %p984_p2 = por %p983_p1, %p982_p0 }
  0xd4   : > { %689 = vperm.xlu0 %964, %v663_v31  }
  0xd5   : > { %p978_p13 = pneg %p977_p12 }
  0xd7   : > { %706 = vperm.xlu1 %965, %v664_v12   ;;  %p985_p3 = pnand %p984_p2, %p978_p13 }
  0xd8   : > { %723 = vperm.xlu0 %964, %v665_v32  }
  0xdb   : > { %740 = vperm.xlu1 %965, %v666_v33  }
  0xdc   : > { %757 = vperm.xlu0 %964, %v667_v34  }
  0xdf   : > { %774 = vperm.xlu1 %965, %v668_v35  }
  0xe0   : > { %791 = vperm.xlu0 %964, %v669_v36  }
  0xe3   : > { %809 = vperm.xlu1 %965, %v806_v37  }
 0x10b   : > { %v477_v50 = vpop.permute.xlu1 %476 }
 0x121   : > { %v446_v52 = vpop.permute.xlu1 %445 }
 0x122   : > { %v448_v53 = vpop.permute.xlu0 %447  ;;  %v450_v2 = vsel %vm449_vm2, %v444_v40, %v446_v52 }
 0x123   : > { %v451_v17 = vsel %vm449_vm2, %v446_v52, %v448_v53  ;;  %v454_v6 = vsel %vm1313_vm3, %v450_v2, 0.0 }
 0x124   : > { %v455_v7 = vsel %vm1317_vm4, %v451_v17, 0.0  ;;  %v461_v16 = vmul.f32 %v459_v39, %v454_v6 }
 0x125   : > { %v496_v55 = vpop.permute.xlu1 %495  ;;  %v462_v18 = vmul.f32 %v459_v39, %v455_v7 }
 0x126   : > { %v498_v56 = vpop.permute.xlu0 %497  ;;  %v500_v8 = vsel %vm499_vm5, %v494_v42, %v496_v55 }
 0x127   : > { %v501_v9 = vsel %vm499_vm5, %v496_v55, %v498_v56  ;;  %v504_v28 = vsel %vm1321_vm7, %v500_v8, 0.0 }
 0x128   : > { %v505_v29 = vsel %vm1325_vm8, %v501_v9, 0.0  ;;  %v511_v37 = vmul.f32 %v509_v38, %v504_v28 }
 0x129   : > { %v520_v58 = vpop.permute.xlu1 %519  ;;  %v512_v39 = vmul.f32 %v509_v38, %v505_v29  ;;  %v542_v38 = vmul.f32 %v1302_v43, %v1242_v11 }
 0x12a   : > { %v518_v60 = vpop.permute.xlu0 %517 }
 0x12b   : > { %v522_v14 = vsel %vm521_vm6, %v516_v44, %v518_v60  ;;  %v523_v15 = vsel %vm521_vm6, %v518_v60, %v520_v58 }
 0x12c   : > { %v526_v31 = vsel %vm1313_vm3, %v522_v14, 0.0  ;;  %v527_v12 = vsel %vm1317_vm4, %v523_v15, 0.0 }
 0x12d   : > { %v553_v62 = vpop.permute.xlu1 %552  ;;  %v533_v44 = vmul.f32 %v531_v41, %v526_v31  ;;  %v534_v52 = vmul.f32 %v531_v41, %v527_v12 }
 0x12e   : > { %v555_v0 = vpop.permute.xlu0 %554 }
 0x12f   : > { %v560_v32 = vsel %vm558_vm9, %v555_v0, %v557_v46  ;;  %v559_v33 = vsel %vm558_vm9, %v553_v62, %v555_v0 }
 0x130   : > { %v564_v53 = vsel %vm1325_vm8, %v560_v32, 0.0  ;;  %v563_v54 = vsel %vm1321_vm7, %v559_v33, 0.0 }
 0x131   : > { %v575_v5 = vpop.permute.xlu1 %574  ;;  %v571_v61 = vmul.f32 %v1304_v45, %v564_v53  ;;  %v570_v62 = vmul.f32 %v1304_v45, %v563_v54 }
 0x132   : > { %v577_v10 = vpop.permute.xlu0 %576 }
 0x133   : > { %v582_v56 = vsel %vm580_vm11, %v577_v10, %v579_v48  ;;  %v581_v46 = vsel %vm580_vm11, %v575_v5, %v577_v10 }
 0x134   : > { %v586_v48 = vsel %vm1317_vm4, %v582_v56, 0.0  ;;  %v585_v0 = vsel %vm1313_vm3, %v581_v46, 0.0 }
 0x135   : > { %v481_v30 = vpop.permute.xlu1 %480 }
 0x136   : > { %v479_v34 = vpop.permute.xlu0 %478 }
 0x137   : > { %v483_v35 = vsel %vm482_vm10, %v477_v50, %v479_v34  ;;  %v484_v36 = vsel %vm482_vm10, %v479_v34, %v481_v30  ;;  %v543_v50 = vmul.f32 %v1302_v43, %v1244_v13  ;;  %v593_v13 = vmul.f32 %v1306_v47, %v586_v48 }
 0x138   : > { %v487_v40 = vadd.f32 %v483_v35, %v461_v16  ;;  %v488_v42 = vadd.f32 %v484_v36, %v462_v18  ;;  %v592_v43 = vmul.f32 %v1306_v47, %v585_v0 }
 0x139   : > { %v621_v55 = vpop.permute.xlu1 %620 }
 0x13a   : > { %v513_v57 = vadd.f32 %v511_v37, %v487_v40  ;;  %v514_v58 = vadd.f32 %v512_v39, %v488_v42  ;;  %v623_v59 = vpop.permute.xlu0 %622 }
 0x13b   : > { %v627_v17 = vsel %vm626_vm12, %v621_v55, %v623_v59 }
 0x13c   : > { %v535_v41 = vadd.f32 %v533_v44, %v513_v57  ;;  %v536_v60 = vadd.f32 %v534_v52, %v514_v58  ;;  %v631_v45 = vsel %vm1321_vm7, %v627_v17, 0.0 }
 0x13d   : > { %v625_v2 = vpop.permute.xlu1 %624  ;;  %v638_v28 = vmul.f32 %v1308_v49, %v631_v45 }
 0x13e   : > { %v628_v5 = vsel %vm626_vm12, %v623_v59, %v625_v2  ;;  %v608_v6 = vpop.permute.xlu0 %607  ;;  %v544_v11 = vadd.f32 %v542_v38, %v535_v41  ;;  %v545_v7 = vadd.f32 %v543_v50, %v536_v60 }
 0x13f   : > { %v632_v63 = vsel %vm1325_vm8, %v628_v5, 0.0 }
 0x140   : > { %v572_v8 = vadd.f32 %v570_v62, %v544_v11  ;;  %v573_v9 = vadd.f32 %v571_v61, %v545_v7  ;;  %v639_v29 = vmul.f32 %v1308_v49, %v632_v63 }
 0x141   : > { %v610_v1 = vpop.permute.xlu1 %609 }
 0x142   : > { %v594_v10 = vadd.f32 %v592_v43, %v572_v8  ;;  %v614_v14 = vsel %vm613_vm13, %v608_v6, %v610_v1  ;;  %v595_v15 = vadd.f32 %v593_v13, %v573_v9  ;;  %v612_v16 = vpop.permute.xlu0 %611 }
 0x143   : > { %v615_v18 = vsel %vm613_vm13, %v610_v1, %v612_v16 }
 0x144   : > { %v618_v30 = vadd.f32 %v614_v14, %v594_v10  ;;  %v619_v47 = vadd.f32 %v615_v18, %v595_v15 }
 0x146   : > { %v640_v31 = vadd.f32 %v638_v28, %v618_v30  ;;  %v641_v12 = vadd.f32 %v639_v29, %v619_v47 }
 0x148   : > { %v648_v3 = vadd.f32 %v1310_v51, %v640_v31  ;;  %v649_v32 = vadd.f32 %v1310_v51, %v641_v12 }
 0x14a   : > { %v652_v4 = vmin.f32 %v648_v3, 0.0  ;;  %v653_v33 = vmin.f32 %v649_v32, 0.0  ;;  %vm650_vm14 = vcmp.gt.f32.partialorder %v648_v3, 0.0  ;;  %vm651_vm15 = vcmp.gt.f32.partialorder %v649_v32, 0.0 }
 0x14c   : > { %v654_v34 = vmul.f32 1.442695, %v652_v4  ;;  %v656_v35 = vmul.f32 1.442695, %v653_v33 }
 0x14e   : > { %971 = vpow2.f32 %v654_v34 }
 0x14f   : > { %973 = vpow2.f32 %v656_v35 }
 0x152   : > { %v673_v36 = vpop.permute.xlu1 %672 }
 0x153   : > { %v690_v37 = vpop.permute.xlu0 %689 }
 0x156   : > { %v707_v49 = vpop.permute.xlu1 %706 }
 0x157   : > { %v724_v53 = vpop.permute.xlu0 %723 }
 0x158   : > { %v972_v39 = vpop.eup %971 }
 0x159   : > { %v974_v40 = vpop.eup %973  ;;  %v906_v42 = vadd.f32 -1.0, %v972_v39 }
 0x15a   : > { %v907_v44 = vadd.f32 -1.0, %v974_v40  ;;  %v741_v62 = vpop.permute.xlu1 %740 }
 0x15b   : > { %v660_v52 = vsel %vm650_vm14, %v648_v3, %v906_v42 }
 0x15c   : > { %v661_v54 = vsel %vm651_vm15, %v649_v32, %v907_v44  ;;  %v678_v51 = vrot.slane %v660_v52, %v1199_v19  ;;  %v695_v55 = vrot.slane %v660_v52, %v1203_v21  ;;  %v712_v56 = vrot.slane %v660_v52, %v1209_v24 }
 0x15d   : > { %v682_v46 = vrot.slane %v661_v54, %v1199_v19  ;;  %v699_v57 = vrot.slane %v661_v54, %v1203_v21  ;;  %v716_v58 = vrot.slane %v661_v54, %v1209_v24  ;;  %v729_v50 = vrot.slane %v660_v52, %v1213_v26  ;;  %v758_v21 = vpop.permute.xlu0 %757 }
 0x15e   : > { %v683_v59 = vmul.f32 %v678_v51, %v673_v36  ;;  %v700_v38 = vmul.f32 %v695_v55, %v690_v37  ;;  %v733_v61 = vrot.slane %v661_v54, %v1213_v26  ;;  %v717_v0 = vmul.f32 %v712_v56, %v707_v49  ;;  %v775_v63 = vpop.permute.xlu1 %774 }
 0x15f   : > { %v684_v41 = vmul.f32 %v682_v46, %v673_v36  ;;  %v701_v60 = vmul.f32 %v699_v57, %v690_v37  ;;  %v746_v2 = vrot.slane %v660_v52, %v1201_v20  ;;  %v718_v5 = vmul.f32 %v716_v58, %v707_v49 }
 0x160   : > { %v702_v48 = vadd.f32 %v700_v38, %v683_v59  ;;  %v750_v19 = vrot.slane %v661_v54, %v1201_v20  ;;  %v734_v24 = vmul.f32 %v729_v50, %v724_v53  ;;  %v763_v11 = vrot.slane %v660_v52, %v1205_v22 }
 0x161   : > { %v703_v17 = vadd.f32 %v701_v60, %v684_v41  ;;  %v735_v13 = vmul.f32 %v733_v61, %v724_v53  ;;  %v767_v43 = vrot.slane %v661_v54, %v1205_v22  ;;  %v751_v8 = vmul.f32 %v746_v2, %v741_v62  ;;  %v792_v18 = vpop.permute.xlu0 %791 }
 0x162   : > { %v719_v6 = vadd.f32 %v717_v0, %v702_v48  ;;  %v752_v45 = vmul.f32 %v750_v19, %v741_v62  ;;  %v768_v10 = vmul.f32 %v763_v11, %v758_v21  ;;  %v780_v14 = vrot.slane %v660_v52, %v1211_v25  ;;  %v810_v34 = vpop.permute.xlu1 %809 }
 0x163   : > { %v720_v7 = vadd.f32 %v718_v5, %v703_v17  ;;  %v769_v15 = vmul.f32 %v767_v43, %v758_v21  ;;  %v784_v16 = vrot.slane %v661_v54, %v1211_v25  ;;  %v797_v30 = vrot.slane %v660_v52, %v1215_v27 }
 0x164   : > { %v736_v26 = vadd.f32 %v734_v24, %v719_v6  ;;  %v785_v29 = vmul.f32 %v780_v14, %v775_v63  ;;  %v801_v31 = vrot.slane %v661_v54, %v1215_v27  ;;  %v814_v25 = vcombine.high %v1207_v23, %v1207_v23 }
 0x165   : > { %v737_v9 = vadd.f32 %v735_v13, %v720_v7  ;;  %v786_v47 = vmul.f32 %v784_v16, %v775_v63  ;;  %v802_v3 = vmul.f32 %v797_v30, %v792_v18 }
 0x166   : > { %v753_v1 = vadd.f32 %v751_v8, %v736_v26  ;;  %v803_v4 = vmul.f32 %v801_v31, %v792_v18 }
 0x167   : > { %v754_v20 = vadd.f32 %v752_v45, %v737_v9 }
 0x168   : > { %v770_v28 = vadd.f32 %v768_v10, %v753_v1 }
 0x169   : > { %v771_v22 = vadd.f32 %v769_v15, %v754_v20 }
 0x16a   : > { %v787_v12 = vadd.f32 %v785_v29, %v770_v28 }
 0x16b   : > { %v788_v32 = vadd.f32 %v786_v47, %v771_v22 }
 0x16c   : > { %v804_v33 = vadd.f32 %v802_v3, %v787_v12 }
 0x16d   : > { %v805_v35 = vadd.f32 %v803_v4, %v788_v32 }
 0x16e   : > { %v812_v36 = vadd.f32 %v810_v34, %v804_v33 }
 0x16f   : > { %v813_v37 = vadd.f32 %v810_v34, %v805_v35 }
 0x170   : > { %v816_v39 = vadd.f32 %v812_v36, %v1207_v23 }
 0x171   : > { %v817_v27 = vadd.f32 %v814_v25, %v813_v37 }
 0x173   : > { %v820_v40 = vcombine.low %v816_v39, %v817_v27 }
 0x175   : > { %822 = vst [vmem:[%s271_s29] sm:$0xff] %v820_v40 }
 0x176   : > { %988 = shalt.err (!%p985_p3)
}
 0x177   : > { %s989_s15 = scalar_lea.hbm %s1389_s16, 128  ;;  %s993_s19 = scalar_lea.hbm %s1438_s7, 256 }
 0x178   : > { %p990_p4 = scmp.ne.s32.totalorder %s1389_s16, %s989_s15  ;;  %p994_p9 = scmp.lt.u32.totalorder %s1389_s16, %s1438_s7 }
 0x179   : > { %p995_p10 = scmp.lt.u32.totalorder %s993_s19, %s989_s15  ;;  %p997_p12 = scmp.lt.u32.totalorder %s989_s15, %s1389_s16 }
 0x17a   : > { %p991_p7 = pnand %p990_p4, %p1128_p5 }
 0x17b   : > { %p996_p11 = por %p995_p10, %p994_p9 }
 0x17c   : > { %p992_p8 = pneg %p991_p7 }
 0x17d   : > { %p998_p13 = por %p997_p12, %p996_p11 }
 0x17f   : > { %p999_p0 = pnand %p998_p13, %p992_p8 }
 0x181   : > { %1002 = shalt.err (!%p999_p0)
}
 0x182   : > { %915 = dma.vmem_to_hbm [thread:$0]  (%p1128_p5), %s1391_s8, 128, %s1389_s16, %s824_s21  }
 0x183 PF: > { %p921_p1 = scmp.ge.s32.totalorder %s1037_s27, 2  ;;  %s850_s13 = sand.u32 1, %s1025_s24  }
 0x184   : > { %s851_s14 = scalar_lea.sflag [#allocation4], %s850_s13 }
 0x185   : > { %p918_p2 = pnand %p921_p1, %p1132_p6 }
 0x187   : > { %1020 = dma.done.wait (!%p918_p2), %s851_s14, 128  }
 0x188   : > { %1022 = vsyncadd (!%p918_p2), %s851_s14, 4294967168  ;;  %p17_p3 = scmp.ge.s32.totalorder %s1115_s30, 4   ;;  %s1449_s24 = smov %s1029_s25 }
 0x189   : > { %s1450_s25 = smov %s1033_s26  ;;  %s1451_s26 = smov %s1126_s10 }
 0x18a   : > { %s1452_s27 = smov %s1115_s30  ;;  %19 = sbr.rel (!%p17_p3) target bundleno = 3 (0x3), region = 83 }
 0x191   :  { %856 = vsyncpa [#allocation4], 1 }
 0x192   :  { %858 = vsyncpa [#allocation4 + $0x1], 1 }

</bundles_post_ra>
